<compile_context>
chip_gen: v6e
topology: v6e:2x2x1
jax: 0.10.0
libtpu: 0.0.40
codegen_flags: <defaults>
</compile_context>

<pallas_src>
import functools

import jax
import jax.numpy as jnp
from jax import lax
from jax.experimental import pallas as pl
from jax.experimental.pallas import tpu as pltpu

# ----------------------------- config (synthetic cfg) ------------------------
B = 2            # batch
N = 128          # points per cloud (one batch per 128-lane tile)
DIM = 3          # cfg['data']['dim']
C_DIM = 32       # cfg['model']['c_dim']
HIDDEN = 32      # encoder / decoder hidden size
NUM_OFFSET = 1   # cfg['data']['num_offset']
S_OFF = 0.001    # cfg['model']['s_offset']

# TODO(synk): NUM_OFFSET > 1 would need the points.repeat(...) path of the
# original forward; this kernel implements the num_offset == 1 case only.
assert NUM_OFFSET == 1


# ------------------------------- Pallas kernel -------------------------------
def encode2points_kernel(pT_ref, wp_ref, w2_ref, wc_ref, wn1p_ref, w2nd_ref,
                         bias_ref, out_ref, *, batch, n, hidden, c_dim):
    f32 = jnp.float32
    bn = batch * n

    pT = pT_ref[...].astype(f32)          # (3, BN) coords on sublanes, points on lanes
    ones_row = jnp.ones((1, bn), f32)     # shared ones row for folded first-layer biases

    # ---- fused first layers on p (K=3 + folded bias): full-lane VPU FMAs ----
    wp = wp_ref[...]                      # (2H, 4) rows [w1|b1 ; wo1p|bo1]
    h_all = (wp[:, 0:1] * pT[0:1, :]
             + wp[:, 1:2] * pT[1:2, :]
             + wp[:, 2:3] * pT[2:3, :]
             + wp[:, 3:4] * ones_row)                          # (2H, BN)
    h_enc = jnp.maximum(h_all[:hidden, :], 0.0)                # encoder L1 (+b1)
    h_off_p = h_all[hidden:, :]                                # offset-dec point part (+bo1)

    # ---- encoder L2 (MXU, lane-dense) ----------------------------------------
    feat = jnp.dot(w2_ref[...], h_enc, preferred_element_type=f32)   # (C, BN)

    # ---- per-batch lane max pool, add b2 on the pooled (C,1), broadcast back --
    bias = bias_ref[...]                                       # (32, 8)
    b2 = bias[:c_dim, 0:1]                                     # (C, 1)
    c_segs = []
    for bb in range(batch):
        cmax = jnp.max(feat[:, bb * n:(bb + 1) * n], axis=1, keepdims=True) + b2
        c_segs.append(jnp.broadcast_to(cmax, (c_dim, n)))
    c_bn = jnp.concatenate(c_segs, axis=1)                     # (C, BN) lane-dense latent

    # ---- offset decoder: latent half-dot consumed immediately -----------------
    hc_off = jnp.dot(wc_ref[0:hidden, :], c_bn, preferred_element_type=f32)   # (H, BN)
    ho = jnp.maximum(h_off_p + hc_off, 0.0)                    # (H, BN)
    w2nd = w2nd_ref[...]                                       # (16, H) rows 0:3 wo2, 8:11 wn2
    bo2 = bias[0:3, 1:2]
    offset = jnp.dot(w2nd[0:3, :], ho, preferred_element_type=f32) + bo2      # (3, BN)
    pts = pT + S_OFF * offset                                  # (3, BN) pre-clip

    # ---- normal decoder (conditions on pre-clip offset points) ---------------
    wn1p = wn1p_ref[...]                                       # (H, 4) cols 0:3 wts, 3 bn1
    hn_p = (wn1p[:, 0:1] * pts[0:1, :]
            + wn1p[:, 1:2] * pts[1:2, :]
            + wn1p[:, 2:3] * pts[2:3, :]
            + wn1p[:, 3:4] * ones_row)                         # (H, BN)
    hc_nrm = jnp.dot(wc_ref[hidden:2 * hidden, :], c_bn, preferred_element_type=f32)
    hn = jnp.maximum(hn_p + hc_nrm, 0.0)                       # (H, BN)
    bn2 = bias[0:3, 2:3]
    normals = jnp.dot(w2nd[8:11, :], hn, preferred_element_type=f32) + bn2    # (3, BN)

    # ---- Encode2Points.forward epilogue --------------------------------------
    pts = jnp.clip(pts, 0.0, 0.99)
    sumsq = jnp.sum(normals * normals, axis=0, keepdims=True)  # (1, BN)
    normals = normals * lax.rsqrt(sumsq + 1e-16)               # single exact EUP op

    # one lane-dense unmasked store: rows 0..2 = points, 3..5 = normals, 6..7 pad
    out = jnp.concatenate([pts, normals, jnp.zeros((2, bn), f32)], axis=0)    # (8, BN)
    out_ref[...] = out.astype(out_ref.dtype)


# --------------------- one-time weight packing (hoisted) ----------------------
def pack_params(params):
    """Pack 14 tiny weight/bias tensors into 6 slabs, all stored (out, in).

    Done once per parameter set so the jitted forward only does:
    input transpose -> pallas_call -> output split."""
    f32 = jnp.float32
    w1b = jnp.concatenate([params["w1"].T, params["b1"].reshape(-1, 1)], axis=1)      # (H, 4)
    wo1pb = jnp.concatenate([params["wo1p"].T, params["bo1"].reshape(-1, 1)], axis=1)  # (H, 4)
    wp = jnp.concatenate([w1b, wo1pb], axis=0).astype(f32)                            # (2H, 4)

    w2 = params["w2"].T.astype(f32)                                                   # (C, H)
    wc = jnp.concatenate([params["wo1c"].T, params["wn1c"].T], axis=0).astype(f32)    # (2H, C)
    wn1p = jnp.concatenate([params["wn1p"].T, params["bn1"].reshape(-1, 1)],
                           axis=1).astype(f32)                                        # (H, 4)

    w2nd = jnp.zeros((16, HIDDEN), f32)
    w2nd = w2nd.at[0:3, :].set(params["wo2"].T)            # wo2
    w2nd = w2nd.at[8:11, :].set(params["wn2"].T)           # wn2 (8-aligned rows)

    bias = jnp.zeros((max(HIDDEN, C_DIM), 8), f32)
    bias = bias.at[:C_DIM, 0].set(params["b2"].reshape(-1))
    bias = bias.at[0:3, 1].set(params["bo2"].reshape(-1))
    bias = bias.at[0:3, 2].set(params["bn2"].reshape(-1))

    return (wp, w2, wc, wn1p, w2nd, bias)


# --------------------------- jitted per-call forward ---------------------------
@jax.jit
def encode2points_forward(p, packed):
    """p: (B, N, 3) float32, packed = pack_params(params).
    Returns (points, normals), each (B, N, 3)."""
    wp, w2, wc, wn1p, w2nd, bias = packed
    b, n, d = p.shape
    assert d == DIM
    assert n % 128 == 0, "per-batch lane segments assume N is a multiple of 128"
    bn = b * n

    # wrapper-side layout plumbing: coordinate-major, lane-dense
    pT = p.reshape(bn, d).T                                            # (3, BN)

    inputs = (pT, wp, w2, wc, wn1p, w2nd, bias)

    def full(shape):
        nd = len(shape)
        return pl.BlockSpec(tuple(shape), lambda i, _nd=nd: (0,) * _nd)

    grid_spec = pltpu.PrefetchScalarGridSpec(
        num_scalar_prefetch=0,
        grid=(1,),                       # single step: whole problem in one shot
        in_specs=[full(x.shape) for x in inputs],
        out_specs=full((8, bn)),
    )

    kernel = functools.partial(
        encode2points_kernel, batch=b, n=n, hidden=HIDDEN, c_dim=C_DIM)

    out = pl.pallas_call(
        kernel,
        out_shape=jax.ShapeDtypeStruct((8, bn), jnp.float32),
        grid_spec=grid_spec,
        compiler_params=pltpu.CompilerParams(
            dimension_semantics=("arbitrary",)),
    )(*inputs)

    # split and transpose back to the external (B, N, 3) layout
    points = out[0:3].reshape(d, b, n).transpose(1, 2, 0)
    normals = out[3:6].reshape(d, b, n).transpose(1, 2, 0)
    return points, normals


# ------------------------ deterministic parameter init ------------------------
def init_params(key):
    ks = jax.random.split(key, 16)
    scale = lambda fan_in: 1.0 / jnp.sqrt(jnp.float32(fan_in))

    def lin(k, i, o):
        return jax.random.normal(k, (i, o), jnp.float32) * scale(i)

    out_off = DIM * NUM_OFFSET
    return {
        # encoder
        "w1":  lin(ks[0], DIM, HIDDEN),
        "b1":  jnp.zeros((1, HIDDEN), jnp.float32),
        "w2":  lin(ks[1], HIDDEN, C_DIM),
        "b2":  jnp.zeros((1, C_DIM), jnp.float32),
        # offset decoder (first layer weight split: point part / latent part)
        "wo1p": lin(ks[2], DIM, HIDDEN),
        "wo1c": lin(ks[3], C_DIM, HIDDEN),
        "bo1":  jnp.zeros((1, HIDDEN), jnp.float32),
        "wo2":  lin(ks[4], HIDDEN, out_off),
        "bo2":  jnp.zeros((1, out_off), jnp.float32),
        # normal decoder
        "wn1p": lin(ks[5], DIM, HIDDEN),
        "wn1c": lin(ks[6], C_DIM, HIDDEN),
        "bn1":  jnp.zeros((1, HIDDEN), jnp.float32),
        "wn2":  lin(ks[7], HIDDEN, DIM),
        "bn2":  jnp.zeros((1, DIM), jnp.float32),
    }


# ------------------------------ pure-JAX reference -----------------------------
def reference_forward(p, params):
    relu = lambda x: jnp.maximum(x, 0.0)
    h = relu(p @ params["w1"] + params["b1"])
    feat = h @ params["w2"] + params["b2"]
    c = jnp.max(feat, axis=1, keepdims=True)                       # (B, 1, C)

    ho = relu(p @ params["wo1p"] + c @ params["wo1c"] + params["bo1"])
    offset = ho @ params["wo2"] + params["bo2"]
    pts = p + S_OFF * offset

    hn = relu(pts @ params["wn1p"] + c @ params["wn1c"] + params["bn1"])
    normals = hn @ params["wn2"] + params["bn2"]

    pts = jnp.clip(pts, 0.0, 0.99)
    normals = normals / (jnp.linalg.norm(normals, axis=-1, keepdims=True) + 1e-8)
    return pts, normals


# ----------------------------------- main -------------------------------------
if __name__ == "__main__":
    key = jax.random.PRNGKey(0)
    k_p, k_w = jax.random.split(key)

    # unoriented input points, uniform in [0, 1) like normalized point clouds
    p = jax.random.uniform(k_p, (B, N, DIM), jnp.float32)
    params = init_params(k_w)

    # one-time packing (hoisted out of the per-call path)
    packed = jax.block_until_ready(pack_params(params))

    points, normals = encode2points_forward(p, packed)
    points, normals = jax.block_until_ready((points, normals))

    # correctness check against pure-JAX reference (exact rsqrt -> tight tolerance)
    ref_points, ref_normals = reference_forward(p, params)
    assert points.shape == (B, N, DIM) and normals.shape == (B, N, DIM)
    assert jnp.allclose(points, ref_points, atol=1e-5, rtol=1e-5)
    assert jnp.allclose(normals, ref_normals, atol=1e-5, rtol=1e-4)

    print("KERNEL_OK")
</pallas_src>

<mosaic_0001>
module attributes {stable_mosaic.version = 11 : i64} {
  func.func @encode2points_kernel(%arg0: i32, %arg1: memref<3x256xf32, #tpu.memory_space<vmem>>, %arg2: memref<64x4xf32, #tpu.memory_space<vmem>>, %arg3: memref<32x32xf32, #tpu.memory_space<vmem>>, %arg4: memref<64x32xf32, #tpu.memory_space<vmem>>, %arg5: memref<32x4xf32, #tpu.memory_space<vmem>>, %arg6: memref<16x32xf32, #tpu.memory_space<vmem>>, %arg7: memref<32x8xf32, #tpu.memory_space<vmem>>, %arg8: memref<8x256xf32, #tpu.memory_space<vmem>>) attributes {dimension_semantics = [#tpu.dimension_semantics<arbitrary>], iteration_bounds = array<i64: 1>, scalar_prefetch = 0 : i64, scratch_operands = 0 : i64, tpu.core_type = #tpu.core_type<tc>, window_params = [{pipeline_mode = #tpu.pipeline_mode<synchronous>, transform_indices = @transform_0, window_bounds = array<i64: 3, 256>}, {pipeline_mode = #tpu.pipeline_mode<synchronous>, transform_indices = @transform_1, window_bounds = array<i64: 64, 4>}, {pipeline_mode = #tpu.pipeline_mode<synchronous>, transform_indices = @transform_2, window_bounds = array<i64: 32, 32>}, {pipeline_mode = #tpu.pipeline_mode<synchronous>, transform_indices = @transform_3, window_bounds = array<i64: 64, 32>}, {pipeline_mode = #tpu.pipeline_mode<synchronous>, transform_indices = @transform_4, window_bounds = array<i64: 32, 4>}, {pipeline_mode = #tpu.pipeline_mode<synchronous>, transform_indices = @transform_5, window_bounds = array<i64: 16, 32>}, {pipeline_mode = #tpu.pipeline_mode<synchronous>, transform_indices = @transform_6, window_bounds = array<i64: 32, 8>}, {pipeline_mode = #tpu.pipeline_mode<synchronous>, transform_indices = @transform_7, window_bounds = array<i64: 8, 256>}]} {
    %c0 = arith.constant 0 : index
    %c0_0 = arith.constant 0 : index
    %0 = vector.load %arg1[%c0, %c0_0] : memref<3x256xf32, #tpu.memory_space<vmem>>, vector<3x256xf32>
    %cst = arith.constant 1.000000e+00 : f32
    %1 = vector.broadcast %cst : f32 to vector<1x256xf32>
    %c0_1 = arith.constant 0 : index
    %c0_2 = arith.constant 0 : index
    %2 = vector.load %arg2[%c0_1, %c0_2] : memref<64x4xf32, #tpu.memory_space<vmem>>, vector<64x4xf32>
    %3 = vector.extract_strided_slice %2 {offsets = [0, 0], sizes = [64, 1], strides = [1, 1]} : vector<64x4xf32> to vector<64x1xf32>
    %4 = vector.extract_strided_slice %0 {offsets = [0, 0], sizes = [1, 256], strides = [1, 1]} : vector<3x256xf32> to vector<1x256xf32>
    %5 = vector.broadcast %3 : vector<64x1xf32> to vector<64x256xf32>
    %6 = vector.broadcast %4 : vector<1x256xf32> to vector<64x256xf32>
    %7 = arith.mulf %5, %6 : vector<64x256xf32>
    %8 = vector.extract_strided_slice %2 {offsets = [0, 1], sizes = [64, 1], strides = [1, 1]} : vector<64x4xf32> to vector<64x1xf32>
    %9 = vector.extract_strided_slice %0 {offsets = [1, 0], sizes = [1, 256], strides = [1, 1]} : vector<3x256xf32> to vector<1x256xf32>
    %10 = vector.broadcast %8 : vector<64x1xf32> to vector<64x256xf32>
    %11 = vector.broadcast %9 : vector<1x256xf32> to vector<64x256xf32>
    %12 = arith.mulf %10, %11 : vector<64x256xf32>
    %13 = arith.addf %7, %12 : vector<64x256xf32>
    %14 = vector.extract_strided_slice %2 {offsets = [0, 2], sizes = [64, 1], strides = [1, 1]} : vector<64x4xf32> to vector<64x1xf32>
    %15 = vector.extract_strided_slice %0 {offsets = [2, 0], sizes = [1, 256], strides = [1, 1]} : vector<3x256xf32> to vector<1x256xf32>
    %16 = vector.broadcast %14 : vector<64x1xf32> to vector<64x256xf32>
    %17 = vector.broadcast %15 : vector<1x256xf32> to vector<64x256xf32>
    %18 = arith.mulf %16, %17 : vector<64x256xf32>
    %19 = arith.addf %13, %18 : vector<64x256xf32>
    %20 = vector.extract_strided_slice %2 {offsets = [0, 3], sizes = [64, 1], strides = [1, 1]} : vector<64x4xf32> to vector<64x1xf32>
    %21 = vector.broadcast %20 : vector<64x1xf32> to vector<64x256xf32>
    %22 = vector.broadcast %1 : vector<1x256xf32> to vector<64x256xf32>
    %23 = arith.mulf %21, %22 : vector<64x256xf32>
    %24 = arith.addf %19, %23 : vector<64x256xf32>
    %25 = vector.extract_strided_slice %24 {offsets = [0, 0], sizes = [32, 256], strides = [1, 1]} : vector<64x256xf32> to vector<32x256xf32>
    %cst_3 = arith.constant 0.000000e+00 : f32
    %26 = vector.broadcast %cst_3 : f32 to vector<32x256xf32>
    %27 = arith.maximumf %25, %26 : vector<32x256xf32>
    %28 = vector.extract_strided_slice %24 {offsets = [32, 0], sizes = [32, 256], strides = [1, 1]} : vector<64x256xf32> to vector<32x256xf32>
    %c0_4 = arith.constant 0 : index
    %c0_5 = arith.constant 0 : index
    %29 = vector.load %arg3[%c0_4, %c0_5] : memref<32x32xf32, #tpu.memory_space<vmem>>, vector<32x32xf32>
    %cst_6 = arith.constant dense<0.000000e+00> : vector<32x256xf32>
    %30 = tpu.matmul %29, %27, %cst_6 {dimension_numbers = #tpu.dot_dimension_numbers<[1], [0], [0], [1], [0, 0, 1, 1], [], []>} : vector<32x32xf32>, vector<32x256xf32>, vector<32x256xf32> -> vector<32x256xf32>
    %c0_7 = arith.constant 0 : index
    %c0_8 = arith.constant 0 : index
    %31 = vector.load %arg7[%c0_7, %c0_8] : memref<32x8xf32, #tpu.memory_space<vmem>>, vector<32x8xf32>
    %32 = vector.extract_strided_slice %31 {offsets = [0, 0], sizes = [32, 1], strides = [1, 1]} : vector<32x8xf32> to vector<32x1xf32>
    %33 = vector.extract_strided_slice %30 {offsets = [0, 0], sizes = [32, 128], strides = [1, 1]} : vector<32x256xf32> to vector<32x128xf32>
    %cst_9 = arith.constant dense<0xFF800000> : vector<32xf32>
    %34 = vector.multi_reduction <maximumf>, %33, %cst_9 [1] : vector<32x128xf32> to vector<32xf32>
    %35 = vector.shape_cast %34 : vector<32xf32> to vector<32x1xf32>
    %36 = arith.addf %35, %32 : vector<32x1xf32>
    %37 = vector.shape_cast %36 : vector<32x1xf32> to vector<32x1xf32>
    %38 = vector.broadcast %37 : vector<32x1xf32> to vector<32x128xf32>
    %39 = vector.extract_strided_slice %30 {offsets = [0, 128], sizes = [32, 128], strides = [1, 1]} : vector<32x256xf32> to vector<32x128xf32>
    %cst_10 = arith.constant dense<0xFF800000> : vector<32xf32>
    %40 = vector.multi_reduction <maximumf>, %39, %cst_10 [1] : vector<32x128xf32> to vector<32xf32>
    %41 = vector.shape_cast %40 : vector<32xf32> to vector<32x1xf32>
    %42 = arith.addf %41, %32 : vector<32x1xf32>
    %43 = vector.shape_cast %42 : vector<32x1xf32> to vector<32x1xf32>
    %44 = vector.broadcast %43 : vector<32x1xf32> to vector<32x128xf32>
    %45 = tpu.concatenate %38, %44 in 1 : vector<32x128xf32>, vector<32x128xf32> -> vector<32x256xf32>
    %c0_11 = arith.constant 0 : index
    %c0_12 = arith.constant 0 : index
    %46 = vector.load %arg4[%c0_11, %c0_12] : memref<64x32xf32, #tpu.memory_space<vmem>>, vector<32x32xf32>
    %cst_13 = arith.constant dense<0.000000e+00> : vector<32x256xf32>
    %47 = tpu.matmul %46, %45, %cst_13 {dimension_numbers = #tpu.dot_dimension_numbers<[1], [0], [0], [1], [0, 0, 1, 1], [], []>} : vector<32x32xf32>, vector<32x256xf32>, vector<32x256xf32> -> vector<32x256xf32>
    %48 = arith.addf %28, %47 : vector<32x256xf32>
    %cst_14 = arith.constant 0.000000e+00 : f32
    %49 = vector.broadcast %cst_14 : f32 to vector<32x256xf32>
    %50 = arith.maximumf %48, %49 : vector<32x256xf32>
    %c0_15 = arith.constant 0 : index
    %c0_16 = arith.constant 0 : index
    %51 = vector.load %arg6[%c0_15, %c0_16] : memref<16x32xf32, #tpu.memory_space<vmem>>, vector<16x32xf32>
    %52 = vector.extract_strided_slice %31 {offsets = [0, 1], sizes = [3, 1], strides = [1, 1]} : vector<32x8xf32> to vector<3x1xf32>
    %53 = vector.extract_strided_slice %51 {offsets = [0, 0], sizes = [3, 32], strides = [1, 1]} : vector<16x32xf32> to vector<3x32xf32>
    %cst_17 = arith.constant dense<0.000000e+00> : vector<3x256xf32>
    %54 = tpu.matmul %53, %50, %cst_17 {dimension_numbers = #tpu.dot_dimension_numbers<[1], [0], [0], [1], [0, 0, 1, 1], [], []>} : vector<3x32xf32>, vector<32x256xf32>, vector<3x256xf32> -> vector<3x256xf32>
    %55 = vector.broadcast %52 : vector<3x1xf32> to vector<3x256xf32>
    %56 = arith.addf %54, %55 : vector<3x256xf32>
    %cst_18 = arith.constant 1.000000e-03 : f32
    %57 = vector.broadcast %cst_18 : f32 to vector<3x256xf32>
    %58 = arith.mulf %57, %56 : vector<3x256xf32>
    %59 = arith.addf %0, %58 : vector<3x256xf32>
    %c0_19 = arith.constant 0 : index
    %c0_20 = arith.constant 0 : index
    %60 = vector.load %arg5[%c0_19, %c0_20] : memref<32x4xf32, #tpu.memory_space<vmem>>, vector<32x4xf32>
    %61 = vector.extract_strided_slice %60 {offsets = [0, 0], sizes = [32, 1], strides = [1, 1]} : vector<32x4xf32> to vector<32x1xf32>
    %62 = vector.extract_strided_slice %59 {offsets = [0, 0], sizes = [1, 256], strides = [1, 1]} : vector<3x256xf32> to vector<1x256xf32>
    %63 = vector.broadcast %61 : vector<32x1xf32> to vector<32x256xf32>
    %64 = vector.broadcast %62 : vector<1x256xf32> to vector<32x256xf32>
    %65 = arith.mulf %63, %64 : vector<32x256xf32>
    %66 = vector.extract_strided_slice %60 {offsets = [0, 1], sizes = [32, 1], strides = [1, 1]} : vector<32x4xf32> to vector<32x1xf32>
    %67 = vector.extract_strided_slice %59 {offsets = [1, 0], sizes = [1, 256], strides = [1, 1]} : vector<3x256xf32> to vector<1x256xf32>
    %68 = vector.broadcast %66 : vector<32x1xf32> to vector<32x256xf32>
    %69 = vector.broadcast %67 : vector<1x256xf32> to vector<32x256xf32>
    %70 = arith.mulf %68, %69 : vector<32x256xf32>
    %71 = arith.addf %65, %70 : vector<32x256xf32>
    %72 = vector.extract_strided_slice %60 {offsets = [0, 2], sizes = [32, 1], strides = [1, 1]} : vector<32x4xf32> to vector<32x1xf32>
    %73 = vector.extract_strided_slice %59 {offsets = [2, 0], sizes = [1, 256], strides = [1, 1]} : vector<3x256xf32> to vector<1x256xf32>
    %74 = vector.broadcast %72 : vector<32x1xf32> to vector<32x256xf32>
    %75 = vector.broadcast %73 : vector<1x256xf32> to vector<32x256xf32>
    %76 = arith.mulf %74, %75 : vector<32x256xf32>
    %77 = arith.addf %71, %76 : vector<32x256xf32>
    %78 = vector.extract_strided_slice %60 {offsets = [0, 3], sizes = [32, 1], strides = [1, 1]} : vector<32x4xf32> to vector<32x1xf32>
    %79 = vector.broadcast %78 : vector<32x1xf32> to vector<32x256xf32>
    %80 = vector.broadcast %1 : vector<1x256xf32> to vector<32x256xf32>
    %81 = arith.mulf %79, %80 : vector<32x256xf32>
    %82 = arith.addf %77, %81 : vector<32x256xf32>
    %c32 = arith.constant 32 : index
    %c0_21 = arith.constant 0 : index
    %83 = vector.load %arg4[%c32, %c0_21] : memref<64x32xf32, #tpu.memory_space<vmem>>, vector<32x32xf32>
    %cst_22 = arith.constant dense<0.000000e+00> : vector<32x256xf32>
    %84 = tpu.matmul %83, %45, %cst_22 {dimension_numbers = #tpu.dot_dimension_numbers<[1], [0], [0], [1], [0, 0, 1, 1], [], []>} : vector<32x32xf32>, vector<32x256xf32>, vector<32x256xf32> -> vector<32x256xf32>
    %85 = arith.addf %82, %84 : vector<32x256xf32>
    %cst_23 = arith.constant 0.000000e+00 : f32
    %86 = vector.broadcast %cst_23 : f32 to vector<32x256xf32>
    %87 = arith.maximumf %85, %86 : vector<32x256xf32>
    %88 = vector.extract_strided_slice %31 {offsets = [0, 2], sizes = [3, 1], strides = [1, 1]} : vector<32x8xf32> to vector<3x1xf32>
    %89 = vector.extract_strided_slice %51 {offsets = [8, 0], sizes = [3, 32], strides = [1, 1]} : vector<16x32xf32> to vector<3x32xf32>
    %cst_24 = arith.constant dense<0.000000e+00> : vector<3x256xf32>
    %90 = tpu.matmul %89, %87, %cst_24 {dimension_numbers = #tpu.dot_dimension_numbers<[1], [0], [0], [1], [0, 0, 1, 1], [], []>} : vector<3x32xf32>, vector<32x256xf32>, vector<3x256xf32> -> vector<3x256xf32>
    %91 = vector.broadcast %88 : vector<3x1xf32> to vector<3x256xf32>
    %92 = arith.addf %90, %91 : vector<3x256xf32>
    %cst_25 = arith.constant 0.000000e+00 : f32
    %cst_26 = arith.constant 9.900000e-01 : f32
    %93 = vector.broadcast %cst_25 : f32 to vector<3x256xf32>
    %94 = arith.maximumf %93, %59 : vector<3x256xf32>
    %95 = vector.broadcast %cst_26 : f32 to vector<3x256xf32>
    %96 = arith.minimumf %95, %94 : vector<3x256xf32>
    %97 = arith.mulf %92, %92 : vector<3x256xf32>
    %cst_27 = arith.constant dense<0.000000e+00> : vector<256xf32>
    %98 = vector.multi_reduction <add>, %97, %cst_27 [0] : vector<3x256xf32> to vector<256xf32>
    %99 = vector.shape_cast %98 : vector<256xf32> to vector<1x256xf32>
    %cst_28 = arith.constant 1.000000e-16 : f32
    %100 = vector.broadcast %cst_28 : f32 to vector<1x256xf32>
    %101 = arith.addf %99, %100 : vector<1x256xf32>
    %102 = math.rsqrt %101 : vector<1x256xf32>
    %103 = vector.broadcast %102 : vector<1x256xf32> to vector<3x256xf32>
    %104 = arith.mulf %92, %103 : vector<3x256xf32>
    %cst_29 = arith.constant 0.000000e+00 : f32
    %105 = vector.broadcast %cst_29 : f32 to vector<2x256xf32>
    %106 = tpu.concatenate %96, %104, %105 in 0 : vector<3x256xf32>, vector<3x256xf32>, vector<2x256xf32> -> vector<8x256xf32>
    %c0_30 = arith.constant 0 : index
    %c0_31 = arith.constant 0 : index
    %107 = vector.load %arg8[%c0_30, %c0_31] : memref<8x256xf32, #tpu.memory_space<vmem>>, vector<8x256xf32>
    tpu.vector_store %arg8[%c0_30, %c0_31], %106 {strides = array<i32>} : memref<8x256xf32, #tpu.memory_space<vmem>>, vector<8x256xf32>,
    return
  }
  func.func @transform_0(%arg0: i32) -> (i32, i32) {
    %c0_i32 = arith.constant 0 : i32
    %c0_i32_0 = arith.constant 0 : i32
    %c0_i32_1 = arith.constant 0 : i32
    return %c0_i32, %c0_i32_0 : i32, i32
  }
  func.func @transform_1(%arg0: i32) -> (i32, i32) {
    %c0_i32 = arith.constant 0 : i32
    %c0_i32_0 = arith.constant 0 : i32
    %c0_i32_1 = arith.constant 0 : i32
    return %c0_i32, %c0_i32_0 : i32, i32
  }
  func.func @transform_2(%arg0: i32) -> (i32, i32) {
    %c0_i32 = arith.constant 0 : i32
    %c0_i32_0 = arith.constant 0 : i32
    %c0_i32_1 = arith.constant 0 : i32
    return %c0_i32, %c0_i32_0 : i32, i32
  }
  func.func @transform_3(%arg0: i32) -> (i32, i32) {
    %c0_i32 = arith.constant 0 : i32
    %c0_i32_0 = arith.constant 0 : i32
    %c0_i32_1 = arith.constant 0 : i32
    return %c0_i32, %c0_i32_0 : i32, i32
  }
  func.func @transform_4(%arg0: i32) -> (i32, i32) {
    %c0_i32 = arith.constant 0 : i32
    %c0_i32_0 = arith.constant 0 : i32
    %c0_i32_1 = arith.constant 0 : i32
    return %c0_i32, %c0_i32_0 : i32, i32
  }
  func.func @transform_5(%arg0: i32) -> (i32, i32) {
    %c0_i32 = arith.constant 0 : i32
    %c0_i32_0 = arith.constant 0 : i32
    %c0_i32_1 = arith.constant 0 : i32
    return %c0_i32, %c0_i32_0 : i32, i32
  }
  func.func @transform_6(%arg0: i32) -> (i32, i32) {
    %c0_i32 = arith.constant 0 : i32
    %c0_i32_0 = arith.constant 0 : i32
    %c0_i32_1 = arith.constant 0 : i32
    return %c0_i32, %c0_i32_0 : i32, i32
  }
  func.func @transform_7(%arg0: i32) -> (i32, i32) {
    %c0_i32 = arith.constant 0 : i32
    %c0_i32_0 = arith.constant 0 : i32
    %c0_i32_1 = arith.constant 0 : i32
    return %c0_i32, %c0_i32_0 : i32, i32
  }
}

</mosaic_0001>

<bundles_post_ra>
// kernel: encode2points_forward.1
= control target key start
LH: loop header
LB: loop body
LE: loop exit
PB: predicated region body
PF: predicated region fallthrough
CT: control target
= control target key end

     0   :  { %v1192_v0 = vmov 1   ;;  %v1193_v1 = vmov 0   ;;  %v1194_v5 = vmov 2   ;;  %v1195_v7 = vmov 3   ;;  %s1548_s1 = inlined_call_operand.vmem [shape: f32[64,4], index: 1, kind: input, shape index: {}]   ;;  %s1549_s0 = inlined_call_operand.vmem [shape: f32[3,256], index: 0, kind: input, shape index: {}]   ;;  %s1550_s2 = inlined_call_operand.vmem [shape: f32[32,32], index: 2, kind: input, shape index: {}]   ;;  %s1551_s6 = inlined_call_operand.vmem [shape: f32[32,8], index: 6, kind: input, shape index: {}]   ;;  %s1552_s3 = inlined_call_operand.vmem [shape: f32[64,32], index: 3, kind: input, shape index: {}]   ;;  %s1553_s4 = inlined_call_operand.vmem [shape: f32[32,4], index: 4, kind: input, shape index: {}]   ;;  %s1554_s5 = inlined_call_operand.vmem [shape: f32[16,32], index: 5, kind: input, shape index: {}]   ;;  %s1555_s7 = inlined_call_operand.vmem [shape: f32[8,256], index: 7, kind: output, shape index: {}]  }
   0x1   :  { %1151 = vset.pattern.permute.xlu0 %v1192_v0  ;;  %1153 = vset.pattern.permute.xlu1 %v1193_v1  ;;  %v30_v2 = vld [vmem:[%s1548_s1 + $0x18] sm:$0xff]  ;;  %v29_v3 = vld [vmem:[%s1548_s1 + $0x10] sm:$0xff]  ;;  %v28_v4 = vld [vmem:[%s1548_s1 + $0x8] sm:$0xff]  ;;  %v1196_v8 = vmov 0.0   ;;  %v76_v11 = vlaneseq  ;;  %vm334_vm0 = vcmask 261120   ;;  %vm1091_vm1 = vcmask 1042432  }
   0x2   :  { %123 = vperm.xlu0 %1151, %v30_v2   ;;  %47 = vperm.xlu1 %1153, %v29_v3   ;;  %v27_v6 = vld [vmem:[%s1548_s1] sm:$0xff]  ;;  %vm1123_vm2 = vcmask 1045504  }
   0x3   :  { %411 = vmatprep.mubr.f32.mxu0 %v1196_v8  ;;  %584 = vmatprep.mubr.f32.mxu1 %v1196_v8  ;;  %v1266_v13 = vshrl.u32 %v76_v11, 7  ;;  %v1279_v20 = vld [vmem:[%s1549_s0] sm:$0x77] }
   0x5   :  { %v148_v15 = vsub.s32 5, %v1266_v13  ;;  %v82_v16 = vsub.s32 4, %v1266_v13  ;;  %v1271_v17 = vsub.s32 1, %v1266_v13  ;;  %v1274_v19 = vsub.s32 0, %v1266_v13 }
   0x6   :  { %1152 = vset.pattern.permute.xlu0 %v1193_v1  ;;  %1154 = vset.pattern.permute.xlu1 %v1192_v0  ;;  %v1285_v22 = vsub.s32 2, %v1266_v13  ;;  %v230_v23 = vsub.s32 6, %v1266_v13 }
   0x7   :  { %52 = vperm.xlu0 %1152, %v30_v2   ;;  %119 = vperm.xlu1 %1154, %v29_v3   ;;  %v149_v21 = vrot.slane %v1279_v20, %v148_v15  ;;  %v83_v25 = vrot.slane %v1279_v20, %v82_v16  ;;  %v145_v26 = vrot.slane %v1279_v20, %v1271_v17 }
   0x8   :  { %v79_v27 = vrot.slane %v1279_v20, %v1274_v19  ;;  %v227_v30 = vrot.slane %v1279_v20, %v1285_v22  ;;  %v231_v31 = vrot.slane %v1279_v20, %v230_v23 }
   0x9   :  { %v1296_v29 = vrot.slane %v149_v21, %v1271_v17  ;;  %v1304_v32 = vrot.slane %v83_v25, %v1274_v19  ;;  %v1307_v33 = vrot.slane %v145_v26, %v1271_v17 }
   0xa   :  { %v1310_v35 = vrot.slane %v79_v27, %v1274_v19  ;;  %v1314_v37 = vrot.slane %v227_v30, %v1285_v22  ;;  %v1317_v38 = vrot.slane %v231_v31, %v1285_v22 }
   0xb   :  { %1155 = vset.pattern.permute.xlu1 %v1194_v5  ;;  %42 = vperm.xlu0 %1152, %v28_v4  }
   0xc   :  { %205 = vperm.xlu1 %1155, %v30_v2  }
   0xf   :  { %37 = vperm.xlu0 %1152, %v27_v6  }
  0x10   :  { %1156 = vset.pattern.permute.xlu1 %v1192_v0 }
  0x11   :  { %115 = vperm.xlu1 %1156, %v28_v4  }
  0x13   :  { %1159 = vset.pattern.permute.xlu0 %v1194_v5 }
  0x14   :  { %197 = vperm.xlu0 %1159, %v28_v4  }
  0x15   :  { %1157 = vset.pattern.permute.xlu1 %v1194_v5 }
  0x16   :  { %201 = vperm.xlu1 %1157, %v29_v3  }
  0x18   :  { %1162 = vset.pattern.permute.xlu0 %v1195_v7 }
  0x19   :  { %283 = vperm.xlu0 %1162, %v29_v3  }
  0x1a   :  { %1158 = vset.pattern.permute.xlu1 %v1192_v0 }
  0x1b   :  { %111 = vperm.xlu1 %1158, %v27_v6  }
  0x1d   :  { %1164 = vset.pattern.permute.xlu0 %v1193_v1 }
  0x1f   :  { %1160 = vset.pattern.permute.xlu1 %v1195_v7 }
  0x20   :  { %287 = vperm.xlu1 %1160, %v30_v2  }
  0x24   :  { %1161 = vset.pattern.permute.xlu1 %v1194_v5 }
  0x25   :  { %193 = vperm.xlu1 %1161, %v27_v6  }
  0x29   :  { %1163 = vset.pattern.permute.xlu1 %v1195_v7 }
  0x2a   :  { %279 = vperm.xlu1 %1163, %v28_v4  }
  0x2e   :  { %275 = vperm.xlu1 %1163, %v27_v6  }
  0x32   :  { %1165 = vset.pattern.permute.xlu1 %v1193_v1 }
  0x7d   :  { %v48_v9 = vpop.permute.xlu1 %47  ;;  %v124_v10 = vpop.permute.xlu0 %123 }
  0x7e   :  { %v166_v40 = vmul.f32 %v1307_v33, %v124_v10  ;;  %v167_v41 = vmul.f32 %v1296_v29, %v124_v10  ;;  %v99_v44 = vmul.f32 %v1304_v32, %v48_v9  ;;  %v98_v47 = vmul.f32 %v1310_v35, %v48_v9 }
  0x82   :  { %v120_v12 = vpop.permute.xlu1 %119  ;;  %v53_v14 = vpop.permute.xlu0 %52 }
  0x83   :  { %v165_v36 = vmul.f32 %v1296_v29, %v120_v12  ;;  %v100_v42 = vmul.f32 %v1310_v35, %v53_v14  ;;  %v101_v43 = vmul.f32 %v1304_v32, %v53_v14  ;;  %v164_v45 = vmul.f32 %v1307_v33, %v120_v12 }
  0x85   :  { %v181_v48 = vadd.f32 %v165_v36, %v99_v44  ;;  %v182_v51 = vadd.f32 %v166_v40, %v100_v42  ;;  %v183_v52 = vadd.f32 %v167_v41, %v101_v43  ;;  %v180_v56 = vadd.f32 %v164_v45, %v98_v47 }
  0x86   :  { %v43_v24 = vpop.permute.xlu0 %42 }
  0x87   :  { %v206_v18 = vpop.permute.xlu1 %205  ;;  %v96_v62 = vmul.f32 %v1310_v35, %v43_v24  ;;  %v97_v63 = vmul.f32 %v1304_v32, %v43_v24 }
  0x88   :  { %v248_v53 = vmul.f32 %v1314_v37, %v206_v18  ;;  %v249_v54 = vmul.f32 %v1317_v38, %v206_v18 }
  0x8a   :  { %v38_v34 = vpop.permute.xlu0 %37  ;;  %v264_v60 = vadd.f32 %v248_v53, %v182_v51  ;;  %v265_v61 = vadd.f32 %v249_v54, %v183_v52 }
  0x8b   :  { %v94_v36 = vmul.f32 %v1310_v35, %v38_v34 }
  0x8c   :  { %v116_v28 = vpop.permute.xlu1 %115 }
  0x8d   :  { %v162_v2 = vmul.f32 %v1307_v33, %v116_v28  ;;  %v163_v4 = vmul.f32 %v1296_v29, %v116_v28 }
  0x8f   :  { %v198_v49 = vpop.permute.xlu0 %197  ;;  %v178_v18 = vadd.f32 %v162_v2, %v96_v62  ;;  %v179_v21 = vadd.f32 %v163_v4, %v97_v63 }
  0x90   :  { %v244_v25 = vmul.f32 %v1314_v37, %v198_v49  ;;  %v245_v26 = vmul.f32 %v1317_v38, %v198_v49 }
  0x91   :  { %v202_v39 = vpop.permute.xlu1 %201 }
  0x92   :  { %v247_v46 = vmul.f32 %v1317_v38, %v202_v39  ;;  %v246_v50 = vmul.f32 %v1314_v37, %v202_v39  ;;  %v95_v39 = vmul.f32 %v1304_v32, %v38_v34  ;;  %v260_v42 = vadd.f32 %v244_v25, %v178_v18 }
  0x93   :  { %v261_v43 = vadd.f32 %v245_v26, %v179_v21 }
  0x94   :  { %v263_v57 = vadd.f32 %v247_v46, %v181_v48  ;;  %v284_v58 = vpop.permute.xlu0 %283  ;;  %v262_v59 = vadd.f32 %v246_v50, %v180_v56 }
  0x96   :  { %v112_v55 = vpop.permute.xlu1 %111  ;;  %v311_v6 = vadd.f32 %v284_v58, %v263_v57  ;;  %v310_v11 = vadd.f32 %v284_v58, %v262_v59  ;;  %v330_v57 = vld [vmem:[%s1550_s2] sm:$0xff]  ;;  %v331_v58 = vld [vmem:[%s1550_s2 + $0x8] sm:$0xff]  ;;  %v332_v59 = vld [vmem:[%s1550_s2 + $0x10] sm:$0xff] }
  0x97   :  { %v160_v31 = vmul.f32 %v1307_v33, %v112_v55  ;;  %v161_v28 = vmul.f32 %v1296_v29, %v112_v55 }
  0x98   :  { %v327_v27 = vmax.f32 %v311_v6, 0.0  ;;  %v326_v24 = vmax.f32 %v310_v11, 0.0  ;;  %v439_v11 = vld [vmem:[%s1551_s6 + $0x18] sm:$0xff] }
  0x99   :  { %v176_v45 = vadd.f32 %v160_v31, %v94_v36  ;;  %v177_v46 = vadd.f32 %v161_v28, %v95_v39  ;;  %v31_v36 = vld [vmem:[%s1548_s1 + $0x20] sm:$0xff] }
  0x9b   :  { %v288_v3 = vpop.permute.xlu1 %287 }
  0x9c   :  { %v312_v9 = vadd.f32 %v288_v3, %v264_v60  ;;  %v313_v10 = vadd.f32 %v288_v3, %v265_v61  ;;  %v333_v60 = vld [vmem:[%s1550_s2 + $0x18] sm:$0xff] }
  0x9e   :  { %v329_v12 = vmax.f32 %v313_v10, 0.0  ;;  %v328_v14 = vmax.f32 %v312_v9, 0.0 }
  0xa0   :  { %v194_v30 = vpop.permute.xlu1 %193  ;;  %371 = vmatprep.subr.mxu0 %v329_v12  ;;  %v438_v12 = vld [vmem:[%s1551_s6 + $0x10] sm:$0xff] }
  0xa1   :  { %372 = vmatpush1.msra.mxu0 %v328_v14  ;;  %v242_v40 = vmul.f32 %v1314_v37, %v194_v30  ;;  %v243_v41 = vmul.f32 %v1317_v38, %v194_v30 }
  0xa2   :  { %373 = vmatprep.subr.mxu0 %v327_v27  ;;  %v33_v27 = vld [vmem:[%s1548_s1 + $0x30] sm:$0xff] }
  0xa3   :  { %374 = vmatpush1.msra.mxu0 %v326_v24  ;;  %v258_v51 = vadd.f32 %v242_v40, %v176_v45  ;;  %v259_v52 = vadd.f32 %v243_v41, %v177_v46  ;;  %v437_v24 = vld [vmem:[%s1551_s6 + $0x8] sm:$0xff]  ;;  %v34_v41 = vld [vmem:[%s1548_s1 + $0x38] sm:$0xff] }
  0xa5   :  { %v280_v44 = vpop.permute.xlu1 %279 }
  0xa6   :  { %v308_v47 = vadd.f32 %v280_v44, %v260_v42  ;;  %v309_v48 = vadd.f32 %v280_v44, %v261_v43  ;;  %v1385_v43 = vld [vmem:[%s1551_s6] sm:$0xff] }
  0xa8   :  { %v324_v49 = vmax.f32 %v308_v47, 0.0  ;;  %v325_v50 = vmax.f32 %v309_v48, 0.0  ;;  %v32_v48 = vld [vmem:[%s1548_s1 + $0x28] sm:$0xff] }
  0xa9   :  { %v276_v53 = vpop.permute.xlu1 %275 }
  0xaa   :  { %v306_v54 = vadd.f32 %v276_v53, %v258_v51  ;;  %v307_v55 = vadd.f32 %v276_v53, %v259_v52  ;;  %375 = vmatprep.subr.mxu0 %v325_v50 }
  0xab   :  { %376 = vmatpush1.msra.mxu0 %v324_v49 }
  0xac   :  { %v322_v34 = vmax.f32 %v306_v54, 0.0  ;;  %v323_v56 = vmax.f32 %v307_v55, 0.0 }
  0xae   :  { %377 = vmatprep.subr.mxu0 %v323_v56 }
  0xaf   :  { %378 = vmatpush1.msra.mxu0 %v322_v34  ;;  %v504_v34 = vld [vmem:[%s1552_s3] sm:$0xff] }
  0xb0   :  { %1132 = vmatmul.mubr.msk.f32.vlgmr.msra.gmra.mxu0 %vm334_vm0, %v330_v57  ;;  %v505_v57 = vld [vmem:[%s1552_s3 + $0x8] sm:$0xff] }
  0xb1   :  { %417 = vmatprep.mubr.f32.mxu0 %v1196_v8 }
  0xb4   :  { %1133 = vmatmul.mubr.msk.f32.gmra.mxu0 %vm334_vm0, %v331_v58  ;;  %v506_v58 = vld [vmem:[%s1552_s3 + $0x10] sm:$0xff] }
  0xb5   :  { %423 = vmatprep.mubr.f32.mxu0 %v1196_v8 }
  0xb8   :  { %1134 = vmatmul.mubr.msk.f32.gmra.mxu0 %vm334_vm0, %v332_v59  ;;  %v507_v59 = vld [vmem:[%s1552_s3 + $0x18] sm:$0xff] }
  0xb9   :  { %429 = vmatprep.mubr.f32.mxu0 %v1196_v8 }
  0xbc   :  { %1135 = vmatmul.mubr.msk.f32.gmra.mxu0 %vm334_vm0, %v333_v60  ;;  %v888_v60 = vld [vmem:[%s1552_s3 + $0x20] sm:$0xff] }
  0xbd   :  { %699 = vmatprep.mubr.f32.mxu0 %v1196_v8 }
 0x170   :  { %v413_v61 = vpop.f32.mrf.mxu0 }
 0x172   :  { %v415_v62 = vpop.f32.mrf.mxu0 }
 0x174   :  { %v419_v63 = vpop.f32.mrf.mxu0 }
 0x176   :  { %v421_v2 = vpop.f32.mrf.mxu0 }
 0x178   :  { %v425_v3 = vpop.f32.mrf.mxu0 }
 0x179   :  { %444 = vmax.xlane.f32.xlu0 %v425_v3  ;;  %v713_v3 = vld [vmem:[%s1553_s4] sm:$0xff] }
 0x17a   :  { %v427_v4 = vpop.f32.mrf.mxu0 }
 0x17c   :  { %v431_v6 = vpop.f32.mrf.mxu0 }
 0x17d   :  { %476 = vmax.xlane.f32.xlu0 %v427_v4  ;;  %446 = vmax.xlane.f32.xlu1 %v431_v6  ;;  %v891_v4 = vld [vmem:[%s1552_s3 + $0x38] sm:$0xff]  ;;  %v714_v6 = vld [vmem:[%s1553_s4 + $0x8] sm:$0xff] }
 0x17e   :  { %v433_v9 = vpop.f32.mrf.mxu0 }
 0x181   :  { %474 = vmax.xlane.f32.xlu1 %v421_v2  ;;  %478 = vmax.xlane.f32.xlu0 %v433_v9  ;;  %v890_v2 = vld [vmem:[%s1552_s3 + $0x30] sm:$0xff] }
 0x185   :  { %472 = vmax.xlane.f32.xlu1 %v415_v62  ;;  %442 = vmax.xlane.f32.xlu0 %v419_v63  ;;  %v889_v62 = vld [vmem:[%s1552_s3 + $0x28] sm:$0xff]  ;;  %v715_v63 = vld [vmem:[%s1553_s4 + $0x10] sm:$0xff] }
 0x189   :  { %440 = vmax.xlane.f32.xlu0 %v413_v61  ;;  %v716_v61 = vld [vmem:[%s1553_s4 + $0x18] sm:$0xff] }
 0x202   :  { %v445_v10 = vpop.xlane.xlu0 %444 }
 0x203   :  { %v450_v30 = vadd.f32 %v445_v10, %v438_v12 }
 0x206   :  { %v477_v14 = vpop.xlane.xlu0 %476  ;;  %v447_v18 = vpop.xlane.xlu1 %446 }
 0x207   :  { %v482_v21 = vadd.f32 %v477_v14, %v438_v12  ;;  %v451_v25 = vadd.f32 %v447_v18, %v439_v11 }
 0x209   :  { %496 = vperm.xlu1 %1165, %v482_v21   ;;  %469 = vperm.xlu0 %1164, %v451_v25  }
 0x20a   :  { %v479_v26 = vpop.xlane.xlu0 %478  ;;  %v475_v31 = vpop.xlane.xlu1 %474 }
 0x20b   :  { %v481_v28 = vadd.f32 %v475_v31, %v437_v24  ;;  %v483_v42 = vadd.f32 %v479_v26, %v439_v11 }
 0x20d   :  { %464 = vperm.xlu1 %1165, %v450_v30   ;;  %67 = vperm.xlu0 %1164, %v33_v27  }
 0x20e   :  { %v443_v39 = vpop.xlane.xlu0 %442  ;;  %v473_v44 = vpop.xlane.xlu1 %472 }
 0x20f   :  { %v449_v40 = vadd.f32 %v443_v39, %v437_v24  ;;  %v480_v45 = vadd.f32 %v473_v44, %v1385_v43 }
 0x211   :  { %491 = vperm.xlu1 %1165, %v481_v28   ;;  %1170 = vset.pattern.permute.xlu0 %v1192_v0 }
 0x212   :  { %127 = vperm.xlu0 %1170, %v31_v36   ;;  %v441_v46 = vpop.xlane.xlu0 %440 }
 0x213   :  { %v448_v47 = vadd.f32 %v441_v46, %v1385_v43 }
 0x215   :  { %459 = vperm.xlu1 %1165, %v449_v40  }
 0x216   :  { %1171 = vset.pattern.permute.xlu0 %v1194_v5 }
 0x217   :  { %221 = vperm.xlu0 %1171, %v34_v41  }
 0x219   :  { %501 = vperm.xlu1 %1165, %v483_v42  }
 0x21b   :  { %217 = vperm.xlu0 %1171, %v33_v27  }
 0x21d   :  { %486 = vperm.xlu1 %1165, %v480_v45  }
 0x21f   :  { %209 = vperm.xlu0 %1171, %v31_v36  }
 0x221   :  { %454 = vperm.xlu1 %1165, %v448_v47  }
 0x223   :  { %1174 = vset.pattern.permute.xlu0 %v1195_v7 }
 0x224   :  { %291 = vperm.xlu0 %1174, %v31_v36  }
 0x225   :  { %72 = vperm.xlu1 %1165, %v34_v41  }
 0x228   :  { %1177 = vset.pattern.permute.xlu0 %v1192_v0 }
 0x229   :  { %1166 = vset.pattern.permute.xlu1 %v1192_v0  ;;  %777 = vperm.xlu0 %1177, %v716_v61  }
 0x22a   :  { %139 = vperm.xlu1 %1166, %v34_v41  }
 0x22d   :  { %765 = vperm.xlu0 %1177, %v713_v3  }
 0x22e   :  { %135 = vperm.xlu1 %1166, %v33_v27  }
 0x231   :  { %1182 = vset.pattern.permute.xlu0 %v1194_v5 }
 0x232   :  { %1167 = vset.pattern.permute.xlu1 %v1193_v1  ;;  %827 = vperm.xlu0 %1182, %v716_v61  }
 0x233   :  { %62 = vperm.xlu1 %1167, %v32_v48  }
 0x236   :  { %823 = vperm.xlu0 %1182, %v715_v63  }
 0x237   :  { %1168 = vset.pattern.permute.xlu1 %v1192_v0 }
 0x238   :  { %131 = vperm.xlu1 %1168, %v32_v48  }
 0x23a   :  { %815 = vperm.xlu0 %1182, %v713_v3  }
 0x23c   :  { %1169 = vset.pattern.permute.xlu1 %v1193_v1 }
 0x23d   :  { %57 = vperm.xlu1 %1169, %v31_v36  }
 0x23e   :  { %1185 = vset.pattern.permute.xlu0 %v1195_v7 }
 0x23f   :  { %865 = vperm.xlu0 %1185, %v713_v3  }
 0x241   :  { %1172 = vset.pattern.permute.xlu1 %v1194_v5 }
 0x242   :  { %213 = vperm.xlu1 %1172, %v32_v48  }
 0x243   :  { %1187 = vset.pattern.permute.xlu0 %v1194_v5 }
 0x246   :  { %1173 = vset.pattern.permute.xlu1 %v1195_v7 }
 0x247   :  { %303 = vperm.xlu1 %1173, %v34_v41  }
 0x24b   :  { %299 = vperm.xlu1 %1173, %v33_v27  }
 0x24f   :  { %295 = vperm.xlu1 %1173, %v32_v48  }
 0x253   :  { %1175 = vset.pattern.permute.xlu1 %v1192_v0 }
 0x254   :  { %629 = vperm.xlu1 %1175, %v1385_v43  }
 0x258   :  { %1176 = vset.pattern.permute.xlu1 %v1193_v1 }
 0x259   :  { %734 = vperm.xlu1 %1176, %v716_v61  }
 0x25d   :  { %729 = vperm.xlu1 %1176, %v715_v63  }
 0x261   :  { %1178 = vset.pattern.permute.xlu1 %v1192_v0 }
 0x262   :  { %773 = vperm.xlu1 %1178, %v715_v63  }
 0x266   :  { %1179 = vset.pattern.permute.xlu1 %v1193_v1 }
 0x267   :  { %724 = vperm.xlu1 %1179, %v714_v6  }
 0x26b   :  { %1180 = vset.pattern.permute.xlu1 %v1192_v0 }
 0x26c   :  { %769 = vperm.xlu1 %1180, %v714_v6  }
 0x270   :  { %1181 = vset.pattern.permute.xlu1 %v1193_v1 }
 0x271   :  { %719 = vperm.xlu1 %1181, %v713_v3  }
 0x275   :  { %1183 = vset.pattern.permute.xlu1 %v1194_v5 }
 0x276   :  { %819 = vperm.xlu1 %1183, %v714_v6  }
 0x27a   :  { %1184 = vset.pattern.permute.xlu1 %v1195_v7 }
 0x27b   :  { %877 = vperm.xlu1 %1184, %v716_v61  }
 0x27f   :  { %873 = vperm.xlu1 %1184, %v715_v63  }
 0x283   :  { %869 = vperm.xlu1 %1184, %v714_v6  }
 0x284   :  { %v497_v49 = vpop.permute.xlu1 %496  ;;  %v470_v54 = vpop.permute.xlu0 %469 }
 0x287   :  { %1186 = vset.pattern.permute.xlu1 %v1194_v5 }
 0x288   :  { %v465_v50 = vpop.permute.xlu1 %464  ;;  %1010 = vperm.xlu1 %1186, %v1385_v43   ;;  %v68_v11 = vpop.permute.xlu0 %67 }
 0x289   :  { %v106_v7 = vmul.f32 %v1310_v35, %v68_v11  ;;  %v107_v30 = vmul.f32 %v1304_v32, %v68_v11 }
 0x28c   :  { %v492_v51 = vpop.permute.xlu1 %491 }
 0x28d   :  { %v128_v14 = vpop.permute.xlu0 %127 }
 0x28e   :  { %v168_v5 = vmul.f32 %v1307_v33, %v128_v14  ;;  %v169_v24 = vmul.f32 %v1296_v29, %v128_v14 }
 0x290   :  { %v460_v52 = vpop.permute.xlu1 %459 }
 0x292   :  { %v222_v21 = vpop.permute.xlu0 %221 }
 0x294   :  { %v502_v53 = vpop.permute.xlu1 %501 }
 0x295   :  { %544 = vmatprep.subr.mxu1 %v502_v53 }
 0x296   :  { %545 = vmatpush1.msra.mxu1 %v470_v54  ;;  %v218_v26 = vpop.permute.xlu0 %217 }
 0x297   :  { %546 = vmatprep.subr.mxu1 %v497_v49 }
 0x298   :  { %v487_v55 = vpop.permute.xlu1 %486  ;;  %547 = vmatpush1.msra.mxu1 %v465_v50 }
 0x299   :  { %548 = vmatprep.subr.mxu1 %v492_v51 }
 0x29a   :  { %549 = vmatpush1.msra.mxu1 %v460_v52  ;;  %v210_v46 = vpop.permute.xlu0 %209 }
 0x29b   :  { %550 = vmatprep.subr.mxu1 %v487_v55 }
 0x29c   :  { %v455_v56 = vpop.permute.xlu1 %454 }
 0x29d   :  { %551 = vmatpush1.msra.mxu1 %v455_v56 }
 0x29e   :  { %1136 = vmatmul.mubr.msk.f32.vlgmr.msra.gmra.mxu1 %vm334_vm0, %v504_v34  ;;  %928 = vmatprep.subr.mxu1 %v502_v53  ;;  %v257_v53 = vmul.f32 %v1317_v38, %v222_v21  ;;  %v250_v34 = vmul.f32 %v1314_v37, %v210_v46 }
 0x29f   :  { %929 = vmatpush1.msra.mxu1 %v470_v54  ;;  %590 = vmatprep.mubr.f32.mxu1 %v1196_v8  ;;  %v254_v54 = vmul.f32 %v1314_v37, %v218_v26 }
 0x2a0   :  { %930 = vmatprep.subr.mxu1 %v497_v49  ;;  %v73_v0 = vpop.permute.xlu1 %72 }
 0x2a1   :  { %931 = vmatpush1.msra.mxu1 %v465_v50  ;;  %v108_v31 = vmul.f32 %v1310_v35, %v73_v0  ;;  %v109_v28 = vmul.f32 %v1304_v32, %v73_v0 }
 0x2a2   :  { %1137 = vmatmul.mubr.msk.f32.gmra.mxu1 %vm334_vm0, %v505_v57  ;;  %932 = vmatprep.subr.mxu1 %v492_v51 }
 0x2a3   :  { %933 = vmatpush1.msra.mxu1 %v460_v52  ;;  %596 = vmatprep.mubr.f32.mxu1 %v1196_v8  ;;  %v256_v52 = vmul.f32 %v1314_v37, %v222_v21 }
 0x2a4   :  { %934 = vmatprep.subr.mxu1 %v487_v55 }
 0x2a5   :  { %935 = vmatpush1.msra.mxu1 %v455_v56  ;;  %v140_v9 = vpop.permute.xlu1 %139  ;;  %v251_v56 = vmul.f32 %v1317_v38, %v210_v46 }
 0x2a6   :  { %1138 = vmatmul.mubr.msk.f32.gmra.mxu1 %vm334_vm0, %v506_v58  ;;  %v174_v36 = vmul.f32 %v1307_v33, %v140_v9  ;;  %v175_v39 = vmul.f32 %v1296_v29, %v140_v9 }
 0x2a7   :  { %602 = vmatprep.mubr.f32.mxu1 %v1196_v8 }
 0x2a8   :  { %v190_v55 = vadd.f32 %v174_v36, %v108_v31 }
 0x2a9   :  { %v136_v10 = vpop.permute.xlu1 %135 }
 0x2aa   :  { %1139 = vmatmul.mubr.msk.f32.gmra.mxu1 %vm334_vm0, %v507_v59  ;;  %v173_v42 = vmul.f32 %v1296_v29, %v136_v10  ;;  %v172_v47 = vmul.f32 %v1307_v33, %v136_v10 }
 0x2ab   :  { %968 = vmatprep.mubr.f32.mxu1 %v1196_v8 }
 0x2ac   :  { %v189_v58 = vadd.f32 %v173_v42, %v107_v30  ;;  %v292_v30 = vpop.permute.xlu0 %291 }
 0x2ae   :  { %1141 = vmatmul.mubr.msk.f32.vlgmr.msra.gmra.mxu1 %vm334_vm0, %v888_v60  ;;  %v63_v1 = vpop.permute.xlu1 %62  ;;  %v188_v60 = vadd.f32 %v172_v47, %v106_v7 }
 0x2af   :  { %974 = vmatprep.mubr.f32.mxu1 %v1196_v8  ;;  %v105_v43 = vmul.f32 %v1304_v32, %v63_v1  ;;  %v104_v48 = vmul.f32 %v1310_v35, %v63_v1 }
 0x2b2   :  { %1142 = vmatmul.mubr.msk.f32.gmra.mxu1 %vm334_vm0, %v889_v62 }
 0x2b3   :  { %980 = vmatprep.mubr.f32.mxu1 %v1196_v8  ;;  %v132_v12 = vpop.permute.xlu1 %131 }
 0x2b4   :  { %v171_v44 = vmul.f32 %v1296_v29, %v132_v12  ;;  %v170_v49 = vmul.f32 %v1307_v33, %v132_v12  ;;  %v255_v29 = vmul.f32 %v1317_v38, %v218_v26  ;;  %v270_v12 = vadd.f32 %v254_v54, %v188_v60 }
 0x2b6   :  { %1143 = vmatmul.mubr.msk.f32.gmra.mxu1 %vm334_vm0, %v890_v2  ;;  %v187_v33 = vadd.f32 %v171_v44, %v105_v43  ;;  %v186_v61 = vadd.f32 %v170_v49, %v104_v48  ;;  %v271_v9 = vadd.f32 %v255_v29, %v189_v58 }
 0x2b7   :  { %986 = vmatprep.mubr.f32.mxu1 %v1196_v8 }
 0x2b8   :  { %v58_v18 = vpop.permute.xlu1 %57 }
 0x2b9   :  { %v103_v45 = vmul.f32 %v1304_v32, %v58_v18  ;;  %v102_v50 = vmul.f32 %v1310_v35, %v58_v18  ;;  %v191_v32 = vadd.f32 %v175_v39, %v109_v28 }
 0x2ba   :  { %1144 = vmatmul.mubr.msk.f32.gmra.mxu1 %vm334_vm0, %v891_v4  ;;  %v272_v4 = vadd.f32 %v256_v52, %v190_v55 }
 0x2bb   :  { %v185_v59 = vadd.f32 %v169_v24, %v103_v45  ;;  %v184_v62 = vadd.f32 %v168_v5, %v102_v50  ;;  %v273_v0 = vadd.f32 %v257_v53, %v191_v32 }
 0x2bd   :  { %v214_v25 = vpop.permute.xlu1 %213  ;;  %v267_v1 = vadd.f32 %v251_v56, %v185_v59  ;;  %v266_v21 = vadd.f32 %v250_v34, %v184_v62  ;;  %v778_v56 = vpop.permute.xlu0 %777 }
 0x2be   :  { %v253_v35 = vmul.f32 %v1317_v38, %v214_v25  ;;  %v252_v63 = vmul.f32 %v1314_v37, %v214_v25 }
 0x2bf   :  { %v315_v31 = vadd.f32 %v292_v30, %v267_v1  ;;  %v314_v42 = vadd.f32 %v292_v30, %v266_v21 }
 0x2c0   :  { %v269_v10 = vadd.f32 %v253_v35, %v187_v33  ;;  %v268_v14 = vadd.f32 %v252_v63, %v186_v61 }
 0x2c1   :  { %v766_v33 = vpop.permute.xlu0 %765 }
 0x2c2   :  { %v304_v40 = vpop.permute.xlu1 %303 }
 0x2c3   :  { %v320_v11 = vadd.f32 %v304_v40, %v272_v4  ;;  %v321_v38 = vadd.f32 %v304_v40, %v273_v0 }
 0x2c6   :  { %v300_v2 = vpop.permute.xlu1 %299 }
 0x2c7   :  { %v319_v7 = vadd.f32 %v300_v2, %v271_v9  ;;  %v318_v5 = vadd.f32 %v300_v2, %v270_v12  ;;  %v828_v2 = vpop.permute.xlu0 %827 }
 0x2ca   :  { %v296_v18 = vpop.permute.xlu1 %295 }
 0x2cb   :  { %v317_v25 = vadd.f32 %v296_v18, %v269_v10  ;;  %v316_v39 = vadd.f32 %v296_v18, %v268_v14  ;;  %v824_v1 = vpop.permute.xlu0 %823 }
 0x35e   :  { %v1465_v27 = vpop.f32.mrf.mxu1 }
 0x35f   :  { %v609_v40 = vadd.f32 %v1465_v27, %v314_v42  ;;  %v630_v27 = vpop.permute.xlu1 %629  ;;  %v816_v42 = vpop.permute.xlu0 %815 }
 0x360   :  { %v588_v41 = vpop.f32.mrf.mxu1 }
 0x361   :  { %v610_v48 = vadd.f32 %v588_v41, %v315_v31  ;;  %v617_v29 = vmax.f32 %v609_v40, 0.0 }
 0x362   :  { %v592_v51 = vpop.f32.mrf.mxu1 }
 0x363   :  { %v611_v46 = vadd.f32 %v592_v51, %v316_v39  ;;  %v618_v54 = vmax.f32 %v610_v48, 0.0  ;;  %v625_v51 = vld [vmem:[%s1554_s5] sm:$0xff]  ;;  %v735_v41 = vpop.permute.xlu1 %734 }
 0x364   :  { %v594_v57 = vpop.f32.mrf.mxu1 }
 0x365   :  { %v612_v44 = vadd.f32 %v594_v57, %v317_v25  ;;  %v619_v53 = vmax.f32 %v611_v46, 0.0 }
 0x366   :  { %v598_v3 = vpop.f32.mrf.mxu1 }
 0x367   :  { %v613_v43 = vadd.f32 %v598_v3, %v318_v5  ;;  %v620_v52 = vmax.f32 %v612_v44, 0.0  ;;  %v730_v55 = vpop.permute.xlu1 %729 }
 0x368   :  { %v600_v6 = vpop.f32.mrf.mxu1 }
 0x369   :  { %v614_v28 = vadd.f32 %v600_v6, %v319_v7  ;;  %v621_v50 = vmax.f32 %v613_v43, 0.0 }
 0x36a   :  { %v604_v26 = vpop.f32.mrf.mxu1 }
 0x36b   :  { %v615_v24 = vadd.f32 %v604_v26, %v320_v11  ;;  %v622_v49 = vmax.f32 %v614_v28, 0.0  ;;  %v774_v32 = vpop.permute.xlu1 %773 }
 0x36c   :  { %v606_v37 = vpop.f32.mrf.mxu1 }
 0x36d   :  { %v616_v36 = vadd.f32 %v606_v37, %v321_v38  ;;  %v623_v47 = vmax.f32 %v615_v24, 0.0 }
 0x36e   :  { %v1497_v58 = vpop.f32.mrf.mxu1 }
 0x36f   :  { %v624_v45 = vmax.f32 %v616_v36, 0.0  ;;  %v725_v34 = vpop.permute.xlu1 %724 }
 0x370   :  { %v1499_v60 = vpop.f32.mrf.mxu1 }
 0x371   :  { %659 = vmatprep.subr.mxu0 %v624_v45 }
 0x372   :  { %660 = vmatpush1.msra.mxu0 %v623_v47  ;;  %v1501_v4 = vpop.f32.mrf.mxu1 }
 0x373   :  { %661 = vmatprep.subr.mxu0 %v622_v49  ;;  %v770_v57 = vpop.permute.xlu1 %769 }
 0x374   :  { %662 = vmatpush1.msra.mxu0 %v621_v50  ;;  %v1506_v10 = vpop.f32.mrf.mxu1 }
 0x375   :  { %663 = vmatprep.subr.mxu0 %v620_v52 }
 0x376   :  { %664 = vmatpush1.msra.mxu0 %v619_v53  ;;  %v982_v30 = vpop.f32.mrf.mxu1 }
 0x377   :  { %665 = vmatprep.subr.mxu0 %v618_v54  ;;  %v720_v62 = vpop.permute.xlu1 %719 }
 0x378   :  { %666 = vmatpush1.msra.mxu0 %v617_v29 }
 0x379   :  { %1140 = vmatmul.mubr.msk.f32.vlgmr.msra.gmra.mxu0 %vm334_vm0, %v625_v51 }
 0x37a   :  { %1080 = vmatprep.mubr.f32.mxu0 %v1196_v8 }
 0x37b   :  { %v820_v0 = vpop.permute.xlu1 %819 }
 0x37f   :  { %v878_v24 = vpop.permute.xlu1 %877 }
 0x383   :  { %v874_v29 = vpop.permute.xlu1 %873 }
 0x439   :  { %v701_v59 = vpop.f32.mrf.mxu0 }
 0x43a   :  { %v702_v35 = vadd.f32 %v701_v59, %v630_v27 }
 0x43b   :  { %v703_v61 = vpop.f32.mrf.mxu0 }
 0x43c   :  { %v704_v63 = vadd.f32 %v703_v61, %v630_v27  ;;  %v706_v3 = vmul.f32 0.001, %v702_v35 }
 0x43e   :  { %v707_v8 = vmul.f32 0.001, %v704_v63 }
 0x440   :  { %v710_v6 = vcombine.low %v706_v3, %v707_v8  ;;  %v866_v8 = vpop.permute.xlu0 %865 }
 0x442   :  { %v1504_v9 = vadd.f32 %v710_v6, %v1279_v20 }
 0x444   :  { %v783_v11 = vrot.slane %v1504_v9, %v1271_v17  ;;  %v787_v12 = vrot.slane %v1504_v9, %v148_v15  ;;  %v741_v14 = vrot.slane %v1504_v9, %v1274_v19  ;;  %v745_v18 = vrot.slane %v1504_v9, %v82_v16 }
 0x445   :  { %v833_v20 = vrot.slane %v1504_v9, %v1285_v22  ;;  %v837_v21 = vrot.slane %v1504_v9, %v230_v23 }
 0x446   :  { %v793_v26 = vrot.slane %v783_v11, %v1271_v17  ;;  %v797_v38 = vrot.slane %v787_v12, %v1271_v17  ;;  %v751_v15 = vrot.slane %v741_v14, %v1274_v19  ;;  %v755_v7 = vrot.slane %v745_v18, %v1274_v19  ;;  %v984_v19 = vpop.f32.mrf.mxu1 }
 0x447   :  { %v843_v5 = vrot.slane %v833_v20, %v1285_v22  ;;  %v847_v16 = vrot.slane %v837_v21, %v1285_v22 }
 0x448   :  { %v798_v37 = vmul.f32 %v793_v26, %v766_v33  ;;  %v799_v25 = vmul.f32 %v797_v38, %v766_v33  ;;  %v756_v31 = vmul.f32 %v751_v15, %v720_v62  ;;  %v757_v13 = vmul.f32 %v755_v7, %v720_v62  ;;  %v988_v62 = vpop.f32.mrf.mxu1 }
 0x449   :  { %v854_v28 = vmul.f32 %v843_v5, %v828_v2  ;;  %v855_v23 = vmul.f32 %v847_v16, %v828_v2  ;;  %v850_v36 = vmul.f32 %v843_v5, %v820_v0  ;;  %v851_v39 = vmul.f32 %v847_v16, %v820_v0 }
 0x44a   :  { %v806_v17 = vadd.f32 %v798_v37, %v756_v31  ;;  %v807_v43 = vadd.f32 %v799_v25, %v757_v13  ;;  %v852_v44 = vmul.f32 %v843_v5, %v824_v1  ;;  %v853_v45 = vmul.f32 %v847_v16, %v824_v1 }
 0x44b   :  { %v762_v46 = vmul.f32 %v751_v15, %v735_v41  ;;  %v763_v47 = vmul.f32 %v755_v7, %v735_v41  ;;  %v804_v48 = vmul.f32 %v793_v26, %v778_v56  ;;  %v805_v49 = vmul.f32 %v797_v38, %v778_v56 }
 0x44c   :  { %v848_v22 = vmul.f32 %v843_v5, %v816_v42  ;;  %v849_v40 = vmul.f32 %v847_v16, %v816_v42  ;;  %v760_v50 = vmul.f32 %v751_v15, %v730_v55  ;;  %v761_v52 = vmul.f32 %v755_v7, %v730_v55 }
 0x44d   :  { %v812_v53 = vadd.f32 %v804_v48, %v762_v46  ;;  %v813_v54 = vadd.f32 %v805_v49, %v763_v47  ;;  %v802_v51 = vmul.f32 %v793_v26, %v774_v32  ;;  %v803_v27 = vmul.f32 %v797_v38, %v774_v32 }
 0x44e   :  { %v758_v33 = vmul.f32 %v751_v15, %v725_v34  ;;  %v759_v59 = vmul.f32 %v755_v7, %v725_v34  ;;  %v800_v35 = vmul.f32 %v793_v26, %v770_v57  ;;  %v801_v61 = vmul.f32 %v797_v38, %v770_v57  ;;  %v990_v34 = vpop.f32.mrf.mxu1  ;;  %v870_v26 = vpop.permute.xlu1 %869 }
 0x44f   :  { %v862_v63 = vadd.f32 %v854_v28, %v812_v53  ;;  %v863_v2 = vadd.f32 %v855_v23, %v813_v54  ;;  %v810_v3 = vadd.f32 %v802_v51, %v760_v50  ;;  %v811_v41 = vadd.f32 %v803_v27, %v761_v52 }
 0x450   :  { %v808_v56 = vadd.f32 %v800_v35, %v758_v33  ;;  %v809_v6 = vadd.f32 %v801_v61, %v759_v59  ;;  %v856_v0 = vadd.f32 %v848_v22, %v806_v17  ;;  %v857_v1 = vadd.f32 %v849_v40, %v807_v43 }
 0x451   :  { %v886_v55 = vadd.f32 %v878_v24, %v862_v63  ;;  %v887_v11 = vadd.f32 %v878_v24, %v863_v2  ;;  %v860_v12 = vadd.f32 %v852_v44, %v810_v3  ;;  %v861_v14 = vadd.f32 %v853_v45, %v811_v41 }
 0x452   :  { %v858_v18 = vadd.f32 %v850_v36, %v808_v56  ;;  %v859_v32 = vadd.f32 %v851_v39, %v809_v6  ;;  %v881_v20 = vadd.f32 %v866_v8, %v857_v1  ;;  %v880_v16 = vadd.f32 %v866_v8, %v856_v0 }
 0x453   :  { %v884_v21 = vadd.f32 %v874_v29, %v860_v12  ;;  %v885_v57 = vadd.f32 %v874_v29, %v861_v14  ;;  %v999_v38 = vadd.f32 %v988_v62, %v886_v55  ;;  %v1000_v15 = vadd.f32 %v990_v34, %v887_v11 }
 0x454   :  { %v882_v7 = vadd.f32 %v870_v26, %v858_v18  ;;  %v883_v5 = vadd.f32 %v870_v26, %v859_v32  ;;  %v994_v36 = vadd.f32 %v1499_v60, %v881_v20  ;;  %v993_v42 = vadd.f32 %v1497_v58, %v880_v16  ;;  %v1011_v60 = vpop.permute.xlu1 %1010 }
 0x455   :  { %v997_v37 = vadd.f32 %v982_v30, %v884_v21  ;;  %v998_v25 = vadd.f32 %v984_v19, %v885_v57  ;;  %v1007_v31 = vmax.f32 %v999_v38, 0.0  ;;  %v1008_v13 = vmax.f32 %v1000_v15, 0.0 }
 0x456   :  { %v995_v24 = vadd.f32 %v1501_v4, %v882_v7  ;;  %v996_v28 = vadd.f32 %v1506_v10, %v883_v5  ;;  %v1002_v30 = vmax.f32 %v994_v36, 0.0  ;;  %v1001_v44 = vmax.f32 %v993_v42, 0.0  ;;  %v626_v4 = vld [vmem:[%s1554_s5 + $0x8] sm:$0xff] }
 0x457   :  { %v1006_v23 = vmax.f32 %v998_v25, 0.0  ;;  %1040 = vmatprep.subr.mxu0 %v1008_v13  ;;  %v1005_v39 = vmax.f32 %v997_v37, 0.0  ;;  %v1087_v63 = vmax.f32 %v1504_v9, 0.0 }
 0x458   :  { %1041 = vmatpush1.msra.mxu0 %v1007_v31  ;;  %v1004_v17 = vmax.f32 %v996_v28, 0.0  ;;  %v1003_v43 = vmax.f32 %v995_v24, 0.0 }
 0x459   :  { %1042 = vmatprep.subr.mxu0 %v1006_v23  ;;  %v1088_v3 = vmin.f32 %v1087_v63, 0.99 }
 0x45a   :  { %1043 = vmatpush1.msra.mxu0 %v1005_v39 }
 0x45b   :  { %1044 = vmatprep.subr.mxu0 %v1004_v17  ;;  %v1113_v1 = vcombine.high %v1088_v3, %v1088_v3 }
 0x45c   :  { %1045 = vmatpush1.msra.mxu0 %v1003_v43 }
 0x45d   :  { %1046 = vmatprep.subr.mxu0 %v1002_v30 }
 0x45e   :  { %1047 = vmatpush1.msra.mxu0 %v1001_v44 }
 0x45f   :  { %1145 = vmatmul.mubr.msk.f32.vlgmr.msra.gmra.mxu0 %vm334_vm0, %v626_v4 }
 0x51f   :  { %v1082_v10 = vpop.f32.mrf.mxu0 }
 0x520   :  { %v1083_v58 = vadd.f32 %v1082_v10, %v1011_v60 }
 0x521   :  { %v1084_v45 = vpop.f32.mrf.mxu0 }
 0x522   :  { %v1089_v19 = vmul.f32 %v1083_v58, %v1083_v58  ;;  %v1085_v46 = vadd.f32 %v1084_v45, %v1011_v60 }
 0x524   :  { %v1092_v47 = vsel %vm1091_vm1, %v1089_v19, 0.0  ;;  %v1090_v48 = vmul.f32 %v1085_v46, %v1085_v46 }
 0x525   :  { %v1093_v49 = vrot.slane %v1092_v47, 4 }
 0x526   :  { %v1099_v22 = vsel %vm1091_vm1, %v1090_v48, 0.0 }
 0x527   :  { %v1094_v40 = vadd.f32 %v1093_v49, %v1092_v47  ;;  %v1100_v50 = vrot.slane %v1099_v22, 4 }
 0x529   :  { %v1095_v52 = vrot.slane %v1094_v40, 2  ;;  %v1101_v53 = vadd.f32 %v1100_v50, %v1099_v22 }
 0x52b   :  { %v1096_v54 = vadd.f32 %v1095_v52, %v1094_v40  ;;  %v1102_v29 = vrot.slane %v1101_v53, 2 }
 0x52d   :  { %v1097_v51 = vrot.slane %v1096_v54, 1  ;;  %v1103_v27 = vadd.f32 %v1102_v29, %v1101_v53 }
 0x52f   :  { %v1098_v33 = vadd.f32 %v1097_v51, %v1096_v54  ;;  %v1104_v59 = vrot.slane %v1103_v27, 1 }
 0x531   :  { %v1106_v35 = vadd.f32 1e-16, %v1098_v33  ;;  %v1105_v61 = vadd.f32 %v1104_v59, %v1103_v27 }
 0x533   :  { %1188 = vrsqrt.f32 %v1106_v35  ;;  %v1107_v62 = vadd.f32 1e-16, %v1105_v61 }
 0x535   :  { %1190 = vrsqrt.f32 %v1107_v62 }
 0x540   :  { %v1189_v2 = vpop.eup %1188 }
 0x541   :  { %v1110_v41 = vmul.f32 %v1189_v2, %v1083_v58 }
 0x542   :  { %v1191_v8 = vpop.eup %1190 }
 0x543   :  { %v1117_v56 = vrot.slane %v1110_v41, 5  ;;  %v1111_v6 = vmul.f32 %v1191_v8, %v1085_v46 }
 0x545   :  { %v1121_v0 = vsel %vm1091_vm1, %v1088_v3, %v1117_v56  ;;  %v1118_v55 = vrot.slane %v1111_v6, 5 }
 0x546   :  { %v1124_v11 = vsel %vm1123_vm2, %v1121_v0, 0.0 }
 0x547   :  { %1126 = vst [vmem:[%s1555_s7] sm:$0xff] %v1124_v11  ;;  %v1122_v12 = vsel %vm1091_vm1, %v1113_v1, %v1118_v55 }
 0x548   :  { %v1125_v14 = vsel %vm1123_vm2, %v1122_v12, 0.0 }
 0x549   :  { %1127 = vst [vmem:[%s1555_s7 + $0x8] sm:$0xff] %v1125_v14 }

</bundles_post_ra>
